<compile_context>
chip_gen: v7x
topology: tpu7x:2x2x1
jax: 0.10.0
libtpu: 0.0.40
codegen_flags: <defaults>
</compile_context>

<pallas_src>
import functools

import jax
import jax.numpy as jnp
from jax.experimental import pallas as pl
from jax.experimental.pallas import tpu as pltpu


# ----------------------------------------------------------------------------
# Fused pad + conv3x3 + BN(eval) + ReLU kernel (one batch x row-strip tile per
# grid step).
# ----------------------------------------------------------------------------
def _conv_bn_relu_kernel(TH, W, Cin, Cout, use_im2col,
                         top_rows_ref, bot_rows_ref,          # scalar prefetch
                         x_ref, xtop_ref, xbot_ref, w_ref, scale_ref, shift_ref,
                         o_ref, *scratch):
    # x_ref    : (1, TH, W, Cin) bf16   current output row-strip of the input
    # xtop_ref : (1, 1,  W, Cin) bf16   row just above the strip (clamped)
    # xbot_ref : (1, 1,  W, Cin) bf16   row just below the strip (clamped)
    # w_ref    : (9*Cin, Cout)  bf16    HWIO-flattened conv weight
    # scale_ref: (1, Cout) f32          BN gamma / sqrt(var + eps)
    # shift_ref: (1, Cout) f32          (bias - mean) * scale + beta
    # o_ref    : (1, TH, W, Cout) f32
    # scratch  : (col,) bf16 im2col buffer iff use_im2col else ()
    del top_rows_ref, bot_rows_ref            # only used by the index_maps
    r = pl.program_id(1)
    n_r = pl.num_programs(1)
    M = TH * W

    # --- stitch [top halo ; strip ; bottom halo] as register values (f32) ----
    xs = x_ref[0].reshape(M, Cin).astype(jnp.float32)
    top = (xtop_ref[0].reshape(W, Cin).astype(jnp.float32)
           * (r > 0).astype(jnp.float32))                  # zero at image top
    bot = (xbot_ref[0].reshape(W, Cin).astype(jnp.float32)
           * (r < n_r - 1).astype(jnp.float32))            # zero at image bottom
    xv = jnp.concatenate([top, xs, bot], axis=0)           # ((TH+2)*W, Cin)

    # Edge-column masks: the +-1 column taps wrap exactly at w==0 / w==W-1,
    # which are also the zero-padded positions of the conv.
    w_idx = jax.lax.broadcasted_iota(jnp.int32, (TH, W, Cin), 1).reshape(M, Cin)
    not_left = (w_idx != 0).astype(jnp.float32)
    not_right = (w_idx != W - 1).astype(jnp.float32)

    def tap(dh, dw):
        t = xv[dh * W:dh * W + M, :]          # rows shifted by dh-1 (vertical pad
        if dw == 0:                           #   handled by the masked halos)
            t = pltpu.roll(t, shift=1, axis=0) * not_left      # x[.., w-1, ..]
        elif dw == 2:
            t = pltpu.roll(t, shift=M - 1, axis=0) * not_right  # x[.., w+1, ..]
        return t.astype(jnp.bfloat16)

    if use_im2col:
        # Small Cin: single MXU matmul with contraction K = 9*Cin.
        col = scratch[0]                       # (TH*W, 9*Cin) bf16
        for k in range(9):
            col[:, k * Cin:(k + 1) * Cin] = tap(k // 3, k % 3)
        acc = jnp.dot(col[...], w_ref[...], preferred_element_type=jnp.float32)
    else:
        # Large Cin: skip im2col staging, accumulate 9 per-tap matmuls (K=Cin).
        acc = jnp.zeros((M, Cout), jnp.float32)
        for k in range(9):
            acc = acc + jnp.dot(tap(k // 3, k % 3),
                                w_ref[k * Cin:(k + 1) * Cin, :],
                                preferred_element_type=jnp.float32)

    # --- BatchNorm (eval) scale/shift in f32 + ReLU epilogue ------------------
    y = jnp.maximum(acc * scale_ref[...] + shift_ref[...], 0.0)
    o_ref[0] = y.reshape(TH, W, Cout).astype(o_ref.dtype)


# ----------------------------------------------------------------------------
# VMEM budgeting / strip selection
# ----------------------------------------------------------------------------
def _step_vmem_bytes(TH, W, Cin, Cout, use_im2col):
    b = 2 * TH * W * Cin * 2                    # input strip (bf16), dbl-buffered
    b += 2 * 2 * W * Cin * 2                    # two 1-row halos, dbl-buffered
    b += 2 * TH * W * Cout * 4                  # f32 output strip, dbl-buffered
    b += 2 * (9 * Cin * Cout * 2 + 2 * Cout * 4)  # weights + scale/shift
    if use_im2col:
        b += TH * W * 9 * Cin * 2               # bf16 im2col scratch
    b += TH * W * Cout * 4                      # live f32 accumulator
    b += 3 * TH * W * Cin * 4                   # live f32 strip/tap values
    return b


def _vmem_capacity_bytes():
    try:
        return int(pltpu.get_tpu_info().vmem_capacity_bytes)
    except Exception:
        return 64 << 20                         # conservative (v7x per-core VMEM)


def _pick_row_strip(N, H, W, Cin, Cout, use_im2col, budget_bytes):
    cands = [t for t in (256, 128, 64, 32, 16, 8) if t <= H and H % t == 0]
    if not cands:
        return H   # TODO(synk): remainder-strip path for H not divisible by 8
    fitting = ([t for t in cands
                if _step_vmem_bytes(t, W, Cin, Cout, use_im2col) <= budget_bytes]
               or [cands[-1]])
    for t in fitting:                 # largest VMEM-fitting strip first ...
        if N * (H // t) >= 4:         # ... that still gives enough grid steps for
            return t                  #     pipelining and both v7x TensorCores
    return fitting[-1]


# ----------------------------------------------------------------------------
# Wrappers
# ----------------------------------------------------------------------------
def conv_batch_norm_nhwc(x_nhwc, w_col, scale, shift):
    """conv3x3(pad=1) -> BatchNorm(eval) -> ReLU on NHWC input."""
    N, H, W, Cin = x_nhwc.shape
    Cout = w_col.shape[1]
    assert w_col.shape[0] == 9 * Cin

    use_im2col = Cin < 32
    cap = _vmem_capacity_bytes()
    TH = _pick_row_strip(N, H, W, Cin, Cout, use_im2col, int(cap * 0.4))
    nR = H // TH
    need = _step_vmem_bytes(TH, W, Cin, Cout, use_im2col)
    vmem_limit = int(max(32 << 20, min(int(cap * 0.85), 2 * need)))

    # Halo-row indices, clamped at the image boundary (kernel zero-masks them),
    # delivered via scalar prefetch so the index_maps can address single rows.
    rr = jnp.arange(nR, dtype=jnp.int32)
    top_rows = jnp.maximum(rr * TH - 1, 0).astype(jnp.int32)
    bot_rows = jnp.minimum(rr * TH + TH, H - 1).astype(jnp.int32)

    xb = x_nhwc.astype(jnp.bfloat16)   # bf16 HBM traffic; the MXU is bf16 anyway

    scratch = ([pltpu.VMEM((TH * W, 9 * Cin), jnp.bfloat16)]
               if use_im2col else [])

    grid_spec = pltpu.PrefetchScalarGridSpec(
        num_scalar_prefetch=2,
        grid=(N, nR),
        in_specs=[
            pl.BlockSpec((1, TH, W, Cin), lambda n, r, t, b: (n, r, 0, 0)),
            pl.BlockSpec((1, 1, W, Cin), lambda n, r, t, b: (n, t[r], 0, 0)),
            pl.BlockSpec((1, 1, W, Cin), lambda n, r, t, b: (n, b[r], 0, 0)),
            pl.BlockSpec((9 * Cin, Cout), lambda n, r, t, b: (0, 0)),
            pl.BlockSpec((1, Cout), lambda n, r, t, b: (0, 0)),
            pl.BlockSpec((1, Cout), lambda n, r, t, b: (0, 0)),
        ],
        out_specs=pl.BlockSpec((1, TH, W, Cout), lambda n, r, t, b: (n, r, 0, 0)),
        scratch_shapes=scratch,
    )

    return pl.pallas_call(
        functools.partial(_conv_bn_relu_kernel, TH, W, Cin, Cout, use_im2col),
        out_shape=jax.ShapeDtypeStruct((N, H, W, Cout), jnp.float32),
        grid_spec=grid_spec,
        compiler_params=pltpu.CompilerParams(
            dimension_semantics=("parallel", "parallel"),
            vmem_limit_bytes=vmem_limit),
    )(top_rows, bot_rows, xb, xb, xb, w_col, scale, shift)


def conv_batch_norm(x_nchw, w_col, scale, shift):
    """PyTorch-layout adapter: (N, Cin, H, W) f32 -> (N, Cout, H, W) f32."""
    x = jnp.transpose(x_nchw, (0, 2, 3, 1))            # NCHW -> NHWC (layout glue)
    y = conv_batch_norm_nhwc(x, w_col, scale, shift)
    return jnp.transpose(y, (0, 3, 1, 2))              # NHWC -> NCHW


# ----------------------------------------------------------------------------
# Deterministic parameter init (Conv2d 3x3 + BatchNorm2d, eval-mode)
# ----------------------------------------------------------------------------
def init_conv_batch_norm_params(key, in_channels, out_channels, eps=1e-5):
    """Returns (w_col, scale, shift):
      w_col: (9*Cin, Cout) bf16  HWIO-flattened conv weight (unscaled).
      scale: (1, Cout) f32       gamma / sqrt(running_var + eps).
      shift: (1, Cout) f32       (bias - running_mean) * scale + beta.
    """
    cin, cout = in_channels, out_channels
    k1, k2, k3, k4, k5, k6 = jax.random.split(key, 6)
    w = 0.1 * jax.random.normal(k1, (3, 3, cin, cout), jnp.float32)   # HWIO
    b = 0.1 * jax.random.normal(k2, (cout,), jnp.float32)
    gamma = 1.0 + 0.1 * jax.random.normal(k3, (cout,), jnp.float32)
    beta = 0.1 * jax.random.normal(k4, (cout,), jnp.float32)
    run_mean = 0.1 * jax.random.normal(k5, (cout,), jnp.float32)
    run_var = jnp.abs(jax.random.normal(k6, (cout,), jnp.float32)) + 0.5
    scale = gamma / jnp.sqrt(run_var + eps)
    shift = (b - run_mean) * scale + beta
    w_col = w.reshape(9 * cin, cout).astype(jnp.bfloat16)
    return (w_col, scale.reshape(1, cout).astype(jnp.float32),
            shift.reshape(1, cout).astype(jnp.float32))


# ----------------------------------------------------------------------------
# Pure-JAX reference with matching bf16 input / f32 epilogue numerics
# ----------------------------------------------------------------------------
def _conv_bn_relu_reference(x_nchw, w_col, scale, shift):
    N, Cin, H, W = x_nchw.shape
    x = jnp.transpose(x_nchw, (0, 2, 3, 1)).astype(jnp.bfloat16)
    xp = jnp.pad(x, ((0, 0), (1, 1), (1, 1), (0, 0)))
    taps = [xp[:, dh:dh + H, dw:dw + W, :] for dh in range(3) for dw in range(3)]
    col = jnp.concatenate(taps, axis=-1).astype(jnp.float32)     # (N,H,W,9*Cin)
    y = jnp.einsum('nhwk,kc->nhwc', col, w_col.astype(jnp.float32))
    y = jnp.maximum(y * scale[0] + shift[0], 0.0)
    return jnp.transpose(y, (0, 3, 1, 2)).astype(jnp.float32)


if __name__ == "__main__":
    key = jax.random.PRNGKey(0)
    k_x, k_p, k_x2, k_p2 = jax.random.split(key, 4)

    # --- Case 1: small Cin -> fused im2col path (single K=9*Cin matmul) -----
    N, Cin, H, W, Cout = 2, 4, 16, 16, 8
    x_nchw = jax.random.normal(k_x, (N, Cin, H, W), jnp.float32)
    w_col, scale, shift = init_conv_batch_norm_params(k_p, Cin, Cout)

    y = jax.block_until_ready(conv_batch_norm(x_nchw, w_col, scale, shift))
    assert y.shape == (N, Cout, H, W), y.shape
    assert bool(jnp.all(jnp.isfinite(y)))
    assert bool(jnp.all(y >= 0.0))                    # ReLU output
    y_ref = _conv_bn_relu_reference(x_nchw, w_col, scale, shift)
    err1 = float(jnp.max(jnp.abs(y - y_ref)))
    assert err1 < 1e-2, err1

    # --- Case 2: larger Cin -> per-tap accumulation path (no im2col staging) -
    N2, Cin2, H2, W2, Cout2 = 1, 32, 16, 16, 16
    x2 = jax.random.normal(k_x2, (N2, Cin2, H2, W2), jnp.float32)
    w2, s2, sh2 = init_conv_batch_norm_params(k_p2, Cin2, Cout2)

    y2 = jax.block_until_ready(conv_batch_norm(x2, w2, s2, sh2))
    assert y2.shape == (N2, Cout2, H2, W2), y2.shape
    assert bool(jnp.all(jnp.isfinite(y2)))
    y2_ref = _conv_bn_relu_reference(x2, w2, s2, sh2)
    err2 = float(jnp.max(jnp.abs(y2 - y2_ref)))
    assert err2 < 2e-2, err2

    print("KERNEL_OK")
</pallas_src>

<mosaic_0001>
module attributes {stable_mosaic.version = 11 : i64} {
  func.func @_conv_bn_relu_kernel(%arg0: i32, %arg1: i32, %arg2: memref<2xi32, #tpu.memory_space<smem>>, %arg3: memref<2xi32, #tpu.memory_space<smem>>, %arg4: memref<1x8x16x4xbf16, #tpu.memory_space<vmem>>, %arg5: memref<1x1x16x4xbf16, #tpu.memory_space<vmem>>, %arg6: memref<1x1x16x4xbf16, #tpu.memory_space<vmem>>, %arg7: memref<36x8xbf16, #tpu.memory_space<vmem>>, %arg8: memref<1x8xf32, #tpu.memory_space<vmem>>, %arg9: memref<1x8xf32, #tpu.memory_space<vmem>>, %arg10: memref<1x8x16x8xf32, #tpu.memory_space<vmem>>, %arg11: memref<128x36xbf16, #tpu.memory_space<vmem>>) attributes {dimension_semantics = [#tpu.dimension_semantics<parallel>, #tpu.dimension_semantics<parallel>], iteration_bounds = array<i64: 2, 2>, scalar_prefetch = 2 : i64, scratch_operands = 1 : i64, tpu.core_type = #tpu.core_type<tc>, window_params = [{transform_indices = @transform_0, window_bounds = array<i64: 1, 8, 16, 4>}, {transform_indices = @transform_1, window_bounds = array<i64: 1, 1, 16, 4>}, {transform_indices = @transform_2, window_bounds = array<i64: 1, 1, 16, 4>}, {pipeline_mode = #tpu.pipeline_mode<synchronous>, transform_indices = @transform_3, window_bounds = array<i64: 36, 8>}, {pipeline_mode = #tpu.pipeline_mode<synchronous>, transform_indices = @transform_4, window_bounds = array<i64: 1, 8>}, {pipeline_mode = #tpu.pipeline_mode<synchronous>, transform_indices = @transform_5, window_bounds = array<i64: 1, 8>}, {transform_indices = @transform_6, window_bounds = array<i64: 1, 8, 16, 8>}]} {
    %c0 = arith.constant 0 : index
    %c0_0 = arith.constant 0 : index
    %c0_1 = arith.constant 0 : index
    %c0_2 = arith.constant 0 : index
    %0 = vector.load %arg4[%c0, %c0_0, %c0_1, %c0_2] : memref<1x8x16x4xbf16, #tpu.memory_space<vmem>>, vector<1x8x16x4xbf16>
    %1 = vector.shape_cast %0 : vector<1x8x16x4xbf16> to vector<8x16x4xbf16>
    %2 = vector.shape_cast %1 : vector<8x16x4xbf16> to vector<128x4xbf16>
    %3 = arith.extf %2 : vector<128x4xbf16> to vector<128x4xf32>
    %c0_3 = arith.constant 0 : index
    %c0_4 = arith.constant 0 : index
    %c0_5 = arith.constant 0 : index
    %c0_6 = arith.constant 0 : index
    %4 = vector.load %arg5[%c0_3, %c0_4, %c0_5, %c0_6] : memref<1x1x16x4xbf16, #tpu.memory_space<vmem>>, vector<1x1x16x4xbf16>
    %5 = vector.shape_cast %4 : vector<1x1x16x4xbf16> to vector<1x16x4xbf16>
    %6 = vector.shape_cast %5 : vector<1x16x4xbf16> to vector<16x4xbf16>
    %7 = arith.extf %6 : vector<16x4xbf16> to vector<16x4xf32>
    %c0_i32 = arith.constant 0 : i32
    %8 = arith.cmpi sgt, %arg1, %c0_i32 : i32
    %9 = arith.extui %8 : i1 to i32
    %10 = arith.sitofp %9 : i32 to f32
    %11 = vector.broadcast %10 : f32 to vector<16x4xf32>
    %12 = arith.mulf %7, %11 : vector<16x4xf32>
    %c0_7 = arith.constant 0 : index
    %c0_8 = arith.constant 0 : index
    %c0_9 = arith.constant 0 : index
    %c0_10 = arith.constant 0 : index
    %13 = vector.load %arg6[%c0_7, %c0_8, %c0_9, %c0_10] : memref<1x1x16x4xbf16, #tpu.memory_space<vmem>>, vector<1x1x16x4xbf16>
    %14 = vector.shape_cast %13 : vector<1x1x16x4xbf16> to vector<1x16x4xbf16>
    %15 = vector.shape_cast %14 : vector<1x16x4xbf16> to vector<16x4xbf16>
    %16 = arith.extf %15 : vector<16x4xbf16> to vector<16x4xf32>
    %c1_i32 = arith.constant 1 : i32
    %17 = arith.cmpi slt, %arg1, %c1_i32 : i32
    %18 = arith.extui %17 : i1 to i32
    %19 = arith.sitofp %18 : i32 to f32
    %20 = vector.broadcast %19 : f32 to vector<16x4xf32>
    %21 = arith.mulf %16, %20 : vector<16x4xf32>
    %22 = tpu.concatenate %12, %3, %21 in 0 : vector<16x4xf32>, vector<128x4xf32>, vector<16x4xf32> -> vector<160x4xf32>
    %23 = tpu.iota {dimensions = array<i32: 1>} : vector<8x16x4xi32>
    %24 = vector.shape_cast %23 : vector<8x16x4xi32> to vector<128x4xi32>
    %c0_i32_11 = arith.constant 0 : i32
    %25 = vector.broadcast %c0_i32_11 : i32 to vector<128x4xi32>
    %26 = arith.cmpi ne, %24, %25 : vector<128x4xi32>
    %27 = arith.extui %26 : vector<128x4xi1> to vector<128x4xi32>
    %28 = arith.sitofp %27 : vector<128x4xi32> to vector<128x4xf32>
    %c15_i32 = arith.constant 15 : i32
    %29 = vector.broadcast %c15_i32 : i32 to vector<128x4xi32>
    %30 = arith.cmpi ne, %24, %29 : vector<128x4xi32>
    %31 = arith.extui %30 : vector<128x4xi1> to vector<128x4xi32>
    %32 = arith.sitofp %31 : vector<128x4xi32> to vector<128x4xf32>
    %33 = vector.extract_strided_slice %22 {offsets = [0, 0], sizes = [128, 4], strides = [1, 1]} : vector<160x4xf32> to vector<128x4xf32>
    %c1_i32_12 = arith.constant 1 : i32
    %34 = tpu.dynamic_rotate %33 by %c1_i32_12 dim 0 : vector<128x4xf32>, i32 -> vector<128x4xf32>
    %35 = arith.mulf %34, %28 : vector<128x4xf32>
    %36 = arith.truncf %35 : vector<128x4xf32> to vector<128x4xbf16>
    %c0_13 = arith.constant 0 : index
    %c0_14 = arith.constant 0 : index
    %37 = vector.load %arg11[%c0_13, %c0_14] : memref<128x36xbf16, #tpu.memory_space<vmem>>, vector<128x4xbf16>
    tpu.vector_store %arg11[%c0_13, %c0_14], %36 {strides = array<i32>} : memref<128x36xbf16, #tpu.memory_space<vmem>>, vector<128x4xbf16>,
    %38 = vector.extract_strided_slice %22 {offsets = [0, 0], sizes = [128, 4], strides = [1, 1]} : vector<160x4xf32> to vector<128x4xf32>
    %39 = arith.truncf %38 : vector<128x4xf32> to vector<128x4xbf16>
    %c0_15 = arith.constant 0 : index
    %c4 = arith.constant 4 : index
    %40 = vector.load %arg11[%c0_15, %c4] : memref<128x36xbf16, #tpu.memory_space<vmem>>, vector<128x4xbf16>
    tpu.vector_store %arg11[%c0_15, %c4], %39 {strides = array<i32>} : memref<128x36xbf16, #tpu.memory_space<vmem>>, vector<128x4xbf16>,
    %41 = vector.extract_strided_slice %22 {offsets = [0, 0], sizes = [128, 4], strides = [1, 1]} : vector<160x4xf32> to vector<128x4xf32>
    %c127_i32 = arith.constant 127 : i32
    %42 = tpu.dynamic_rotate %41 by %c127_i32 dim 0 : vector<128x4xf32>, i32 -> vector<128x4xf32>
    %43 = arith.mulf %42, %32 : vector<128x4xf32>
    %44 = arith.truncf %43 : vector<128x4xf32> to vector<128x4xbf16>
    %c0_16 = arith.constant 0 : index
    %c8 = arith.constant 8 : index
    %45 = vector.load %arg11[%c0_16, %c8] : memref<128x36xbf16, #tpu.memory_space<vmem>>, vector<128x4xbf16>
    tpu.vector_store %arg11[%c0_16, %c8], %44 {strides = array<i32>} : memref<128x36xbf16, #tpu.memory_space<vmem>>, vector<128x4xbf16>,
    %46 = vector.extract_strided_slice %22 {offsets = [16, 0], sizes = [128, 4], strides = [1, 1]} : vector<160x4xf32> to vector<128x4xf32>
    %c1_i32_17 = arith.constant 1 : i32
    %47 = tpu.dynamic_rotate %46 by %c1_i32_17 dim 0 : vector<128x4xf32>, i32 -> vector<128x4xf32>
    %48 = arith.mulf %47, %28 : vector<128x4xf32>
    %49 = arith.truncf %48 : vector<128x4xf32> to vector<128x4xbf16>
    %c0_18 = arith.constant 0 : index
    %c12 = arith.constant 12 : index
    %50 = vector.load %arg11[%c0_18, %c12] : memref<128x36xbf16, #tpu.memory_space<vmem>>, vector<128x4xbf16>
    tpu.vector_store %arg11[%c0_18, %c12], %49 {strides = array<i32>} : memref<128x36xbf16, #tpu.memory_space<vmem>>, vector<128x4xbf16>,
    %51 = vector.extract_strided_slice %22 {offsets = [16, 0], sizes = [128, 4], strides = [1, 1]} : vector<160x4xf32> to vector<128x4xf32>
    %52 = arith.truncf %51 : vector<128x4xf32> to vector<128x4xbf16>
    %c0_19 = arith.constant 0 : index
    %c16 = arith.constant 16 : index
    %53 = vector.load %arg11[%c0_19, %c16] : memref<128x36xbf16, #tpu.memory_space<vmem>>, vector<128x4xbf16>
    tpu.vector_store %arg11[%c0_19, %c16], %52 {strides = array<i32>} : memref<128x36xbf16, #tpu.memory_space<vmem>>, vector<128x4xbf16>,
    %54 = vector.extract_strided_slice %22 {offsets = [16, 0], sizes = [128, 4], strides = [1, 1]} : vector<160x4xf32> to vector<128x4xf32>
    %c127_i32_20 = arith.constant 127 : i32
    %55 = tpu.dynamic_rotate %54 by %c127_i32_20 dim 0 : vector<128x4xf32>, i32 -> vector<128x4xf32>
    %56 = arith.mulf %55, %32 : vector<128x4xf32>
    %57 = arith.truncf %56 : vector<128x4xf32> to vector<128x4xbf16>
    %c0_21 = arith.constant 0 : index
    %c20 = arith.constant 20 : index
    %58 = vector.load %arg11[%c0_21, %c20] : memref<128x36xbf16, #tpu.memory_space<vmem>>, vector<128x4xbf16>
    tpu.vector_store %arg11[%c0_21, %c20], %57 {strides = array<i32>} : memref<128x36xbf16, #tpu.memory_space<vmem>>, vector<128x4xbf16>,
    %59 = vector.extract_strided_slice %22 {offsets = [32, 0], sizes = [128, 4], strides = [1, 1]} : vector<160x4xf32> to vector<128x4xf32>
    %c1_i32_22 = arith.constant 1 : i32
    %60 = tpu.dynamic_rotate %59 by %c1_i32_22 dim 0 : vector<128x4xf32>, i32 -> vector<128x4xf32>
    %61 = arith.mulf %60, %28 : vector<128x4xf32>
    %62 = arith.truncf %61 : vector<128x4xf32> to vector<128x4xbf16>
    %c0_23 = arith.constant 0 : index
    %c24 = arith.constant 24 : index
    %63 = vector.load %arg11[%c0_23, %c24] : memref<128x36xbf16, #tpu.memory_space<vmem>>, vector<128x4xbf16>
    tpu.vector_store %arg11[%c0_23, %c24], %62 {strides = array<i32>} : memref<128x36xbf16, #tpu.memory_space<vmem>>, vector<128x4xbf16>,
    %64 = vector.extract_strided_slice %22 {offsets = [32, 0], sizes = [128, 4], strides = [1, 1]} : vector<160x4xf32> to vector<128x4xf32>
    %65 = arith.truncf %64 : vector<128x4xf32> to vector<128x4xbf16>
    %c0_24 = arith.constant 0 : index
    %c28 = arith.constant 28 : index
    %66 = vector.load %arg11[%c0_24, %c28] : memref<128x36xbf16, #tpu.memory_space<vmem>>, vector<128x4xbf16>
    tpu.vector_store %arg11[%c0_24, %c28], %65 {strides = array<i32>} : memref<128x36xbf16, #tpu.memory_space<vmem>>, vector<128x4xbf16>,
    %67 = vector.extract_strided_slice %22 {offsets = [32, 0], sizes = [128, 4], strides = [1, 1]} : vector<160x4xf32> to vector<128x4xf32>
    %c127_i32_25 = arith.constant 127 : i32
    %68 = tpu.dynamic_rotate %67 by %c127_i32_25 dim 0 : vector<128x4xf32>, i32 -> vector<128x4xf32>
    %69 = arith.mulf %68, %32 : vector<128x4xf32>
    %70 = arith.truncf %69 : vector<128x4xf32> to vector<128x4xbf16>
    %c0_26 = arith.constant 0 : index
    %c32 = arith.constant 32 : index
    %71 = vector.load %arg11[%c0_26, %c32] : memref<128x36xbf16, #tpu.memory_space<vmem>>, vector<128x4xbf16>
    tpu.vector_store %arg11[%c0_26, %c32], %70 {strides = array<i32>} : memref<128x36xbf16, #tpu.memory_space<vmem>>, vector<128x4xbf16>,
    %c0_27 = arith.constant 0 : index
    %c0_28 = arith.constant 0 : index
    %72 = vector.load %arg11[%c0_27, %c0_28] : memref<128x36xbf16, #tpu.memory_space<vmem>>, vector<128x36xbf16>
    %c0_29 = arith.constant 0 : index
    %c0_30 = arith.constant 0 : index
    %73 = vector.load %arg7[%c0_29, %c0_30] : memref<36x8xbf16, #tpu.memory_space<vmem>>, vector<36x8xbf16>
    %cst = arith.constant dense<0.000000e+00> : vector<128x8xf32>
    %74 = tpu.matmul %72, %73, %cst {dimension_numbers = #tpu.dot_dimension_numbers<[1], [0], [0], [1], [0, 0, 1, 1], [], []>} : vector<128x36xbf16>, vector<36x8xbf16>, vector<128x8xf32> -> vector<128x8xf32>
    %c0_31 = arith.constant 0 : index
    %c0_32 = arith.constant 0 : index
    %75 = vector.load %arg8[%c0_31, %c0_32] : memref<1x8xf32, #tpu.memory_space<vmem>>, vector<1x8xf32>
    %76 = vector.broadcast %75 : vector<1x8xf32> to vector<128x8xf32>
    %77 = arith.mulf %74, %76 : vector<128x8xf32>
    %c0_33 = arith.constant 0 : index
    %c0_34 = arith.constant 0 : index
    %78 = vector.load %arg9[%c0_33, %c0_34] : memref<1x8xf32, #tpu.memory_space<vmem>>, vector<1x8xf32>
    %79 = vector.broadcast %78 : vector<1x8xf32> to vector<128x8xf32>
    %80 = arith.addf %77, %79 : vector<128x8xf32>
    %cst_35 = arith.constant 0.000000e+00 : f32
    %81 = vector.broadcast %cst_35 : f32 to vector<128x8xf32>
    %82 = arith.maximumf %80, %81 : vector<128x8xf32>
    %83 = vector.shape_cast %82 : vector<128x8xf32> to vector<8x16x8xf32>
    %c0_36 = arith.constant 0 : index
    %c0_37 = arith.constant 0 : index
    %c0_38 = arith.constant 0 : index
    %c0_39 = arith.constant 0 : index
    %84 = vector.load %arg10[%c0_36, %c0_37, %c0_38, %c0_39] : memref<1x8x16x8xf32, #tpu.memory_space<vmem>>, vector<1x8x16x8xf32>
    %85 = vector.shape_cast %84 : vector<1x8x16x8xf32> to vector<8x16x8xf32>
    %86 = vector.shape_cast %83 : vector<8x16x8xf32> to vector<1x8x16x8xf32>
    tpu.vector_store %arg10[%c0_36, %c0_37, %c0_38, %c0_39], %86 {strides = array<i32>} : memref<1x8x16x8xf32, #tpu.memory_space<vmem>>, vector<1x8x16x8xf32>,
    return
  }
  func.func @transform_0(%arg0: i32, %arg1: i32, %arg2: memref<2xi32, #tpu.memory_space<smem>>, %arg3: memref<2xi32, #tpu.memory_space<smem>>) -> (i32, i32, i32, i32) {
    %c0_i32 = arith.constant 0 : i32
    %c0_i32_0 = arith.constant 0 : i32
    %c0_i32_1 = arith.constant 0 : i32
    return %arg0, %arg1, %c0_i32, %c0_i32_0 : i32, i32, i32, i32
  }
  func.func @transform_1(%arg0: i32, %arg1: i32, %arg2: memref<2xi32, #tpu.memory_space<smem>>, %arg3: memref<2xi32, #tpu.memory_space<smem>>) -> (i32, i32, i32, i32) {
    %0 = arith.index_cast %arg1 : i32 to index
    %1 = memref.load %arg2[%0] : memref<2xi32, #tpu.memory_space<smem>>
    %c0_i32 = arith.constant 0 : i32
    %c0_i32_0 = arith.constant 0 : i32
    %c0_i32_1 = arith.constant 0 : i32
    return %arg0, %1, %c0_i32, %c0_i32_0 : i32, i32, i32, i32
  }
  func.func @transform_2(%arg0: i32, %arg1: i32, %arg2: memref<2xi32, #tpu.memory_space<smem>>, %arg3: memref<2xi32, #tpu.memory_space<smem>>) -> (i32, i32, i32, i32) {
    %0 = arith.index_cast %arg1 : i32 to index
    %1 = memref.load %arg3[%0] : memref<2xi32, #tpu.memory_space<smem>>
    %c0_i32 = arith.constant 0 : i32
    %c0_i32_0 = arith.constant 0 : i32
    %c0_i32_1 = arith.constant 0 : i32
    return %arg0, %1, %c0_i32, %c0_i32_0 : i32, i32, i32, i32
  }
  func.func @transform_3(%arg0: i32, %arg1: i32, %arg2: memref<2xi32, #tpu.memory_space<smem>>, %arg3: memref<2xi32, #tpu.memory_space<smem>>) -> (i32, i32) {
    %c0_i32 = arith.constant 0 : i32
    %c0_i32_0 = arith.constant 0 : i32
    %c0_i32_1 = arith.constant 0 : i32
    return %c0_i32, %c0_i32_0 : i32, i32
  }
  func.func @transform_4(%arg0: i32, %arg1: i32, %arg2: memref<2xi32, #tpu.memory_space<smem>>, %arg3: memref<2xi32, #tpu.memory_space<smem>>) -> (i32, i32) {
    %c0_i32 = arith.constant 0 : i32
    %c0_i32_0 = arith.constant 0 : i32
    %c0_i32_1 = arith.constant 0 : i32
    return %c0_i32, %c0_i32_0 : i32, i32
  }
  func.func @transform_5(%arg0: i32, %arg1: i32, %arg2: memref<2xi32, #tpu.memory_space<smem>>, %arg3: memref<2xi32, #tpu.memory_space<smem>>) -> (i32, i32) {
    %c0_i32 = arith.constant 0 : i32
    %c0_i32_0 = arith.constant 0 : i32
    %c0_i32_1 = arith.constant 0 : i32
    return %c0_i32, %c0_i32_0 : i32, i32
  }
  func.func @transform_6(%arg0: i32, %arg1: i32, %arg2: memref<2xi32, #tpu.memory_space<smem>>, %arg3: memref<2xi32, #tpu.memory_space<smem>>) -> (i32, i32, i32, i32) {
    %c0_i32 = arith.constant 0 : i32
    %c0_i32_0 = arith.constant 0 : i32
    %c0_i32_1 = arith.constant 0 : i32
    return %arg0, %arg1, %c0_i32, %c0_i32_0 : i32, i32, i32, i32
  }
}

</mosaic_0001>

<bundles_post_ra>
// kernel: tpu_custom_call.1
= control target key start
LH: loop header
LB: loop body
LE: loop exit
PB: predicated region body
PF: predicated region fallthrough
CT: control target
= control target key end

     0   :  { %s2289_s0 = inlined_call_operand.vmem [shape: s32[2], index: 0, kind: input, shape index: {}]   ;;  %s2290_s2 = inlined_call_operand.vmem [shape: bf16[2,16,16,4], index: 2, kind: input, shape index: {}]   ;;  %s2291_s3 = inlined_call_operand.vmem [shape: bf16[2,16,16,4], index: 3, kind: input, shape index: {}]   ;;  %s2292_s4 = inlined_call_operand.vmem [shape: bf16[2,16,16,4], index: 4, kind: input, shape index: {}]   ;;  %s2293_s5 = inlined_call_operand.vmem [shape: bf16[36,8], index: 5, kind: input, shape index: {}]   ;;  %s2294_s6 = inlined_call_operand.vmem [shape: f32[1,8], index: 6, kind: input, shape index: {}]   ;;  %s2295_s7 = inlined_call_operand.vmem [shape: f32[1,8], index: 7, kind: input, shape index: {}]   ;;  %s2296_s8 = inlined_call_operand.vmem [shape: f32[2,16,16,8], index: 8, kind: output, shape index: {}]   ;;  %s2297_s1 = inlined_call_operand.vmem [shape: s32[2], index: 1, kind: input, shape index: {}]  }
   0x1   :  { %s13_s29 = sshll.u32 %s2289_s0, 4  ;;  %s17_s10 = sshll.u32 %s2297_s1, 4  ;;  %s14_s29 = int_to_ptr.vmem [resolvable:$true] %s13_s29  ;;  %s18_s10 = int_to_ptr.vmem [resolvable:$true] %s17_s10 }
   0x2   :  { %s1464_s11 = scalar_lea.vmem %s14_s29, 16  ;;  %p1469_p1 = scmp.lt.s32.totalorder %s14_s29, %s14_s29 }
   0x3   :  { %p1465_p0 = scmp.ne.s32.totalorder %s14_s29, %s1464_s11  ;;  %p1470_p2 = scmp.lt.s32.totalorder %s1464_s11, %s1464_s11 }
   0x5   :  { %p1471_p3 = por %p1470_p2, %p1469_p1 }
   0x7   :  { %p1472_p4 = pnand %p1471_p3, %p1465_p0 }
   0x9   :  { %1475 = shalt.err (!%p1472_p4)  }
   0xa   :  { %s1530_s12 = smov [#allocation4]   ;;  %s1476_s13 = scalar_lea.vmem %s18_s10, 16 }
   0xb   :  { %16 = dma.vmem_to_smem %s14_s29, 16, %s1530_s12, [#allocation3] }
   0xc   :  { %p1477_p5 = scmp.ne.s32.totalorder %s18_s10, %s1476_s13  ;;  %p1481_p6 = scmp.lt.s32.totalorder %s18_s10, %s18_s10 }
   0xd   :  { %p1482_p7 = scmp.lt.s32.totalorder %s1476_s13, %s1476_s13 }
   0xf   :  { %p1483_p8 = por %p1482_p7, %p1481_p6 }
  0x11   :  { %p1484_p9 = pnand %p1483_p8, %p1477_p5 }
  0x13   :  { %1487 = shalt.err (!%p1484_p9)  }
  0x14   :  { %s1531_s0 = smov [#allocation5]  }
  0x15   :  { %20 = dma.vmem_to_smem %s18_s10, 16, %s1531_s0, [#allocation3] }
  0x16   :  { %1508 = dma.done.wait [#allocation3], 32 }
  0x17   :  { %1509 = vsyncadd [#allocation3], 4294967264 }
  0x18   :  { %22 = sfence }
  0x19   :  { %s1592_s1 = smov 0   ;;  %s1594_s14 = smov 0  }
  0x1a   :  { %s1596_s15 = smov 0   ;;  %s1598_s16 = smov 0  }
  0x1b   :  { %s1600_s17 = smov 0  }
  0x1c LB: > { %s37_s18 = sadd.s32 1, %s1520_s15  ;;  %s40_s19 = sadd.s32 1, %s1524_s16  ;;  %s1528_s17 = sphi %s1600_s17, %s28_s17   ;;  %s1524_s16 = sphi %s1598_s16, %s2301_s16   ;;  %s1520_s15 = sphi %s1596_s15, %s2300_s15   ;;  %s1516_s14 = sphi %s1594_s14, %s2299_s14   ;;  %s1512_s1 = sphi %s1592_s1, %s2298_s1  }
  0x1d   : > { %p38_p10 = scmp.ge.s32.totalorder %s37_s18, 2  ;;  %p1305_p11 = scmp.ge.s32.totalorder %s1528_s17, 1 }
  0x1e   : > { %p286_p12 = scmp.lt.s32.totalorder %s1528_s17, 5 }
  0x1f   : > { %s2303_s18 = smov (%p38_p10, %s37_s18), 0  ;;  %s2305_s19 = smov (!%p38_p10, %s40_s19), %s1524_s16 }
  0x20   : > { %p287_p13 = pnand %p1305_p11, %p286_p12  ;;  %p42_p0 = scmp.ge.s32.totalorder %s2305_s19, 2 }
  0x21   : > { %s1306_s20 = sshll.u32 (!%p287_p13), %s1512_s1, 3  ;;  %p347_p1 = scmp.lt.s32.totalorder (!%p287_p13), %s1516_s14, 1  ;;  %v443_v0 = vlaneseq (!%p287_p13)  ;;  %v1532_v6 = vmov (!%p287_p13), 0.0   ;;  %vm515_vm4 = vcmask (!%p287_p13), 31744   ;;  %vm980_vm5 = vcmask (!%p287_p13), 1041408  }
  0x22   : > { %s2307_s19 = smov (%p42_p0, %s2305_s19), 0  ;;  %290 = sbr.rel (%p287_p13) target bundleno = 525 (0x20d), region = 44 }
  0x23   : > { %p349_p2 = scmp.lt.s32.totalorder (!%p287_p13), %s1306_s20, 15  ;;  %v1625_v1 = vshrl.u32 (!%p287_p13), %v443_v0, 7  ;;  %s1654_s28 = sld [smem:[#allocation4 + %s1512_s1]] (!%p287_p13)  ;;  %vm564_vm6 = vcmask (!%p287_p13), 64544   ;;  %vm662_vm7 = vcmask (!%p287_p13), 97344   ;;  %vm713_vm8 = vcmask (!%p287_p13), 130144  }
  0x24   : > { %p427_p3 = scmp.gt.s32.totalorder (!%p287_p13), %s1512_s1, 0  ;;  %s1533_s29 = smov (!%p287_p13), 4   ;;  %vm748_vm9 = vcmask (!%p287_p13), 162944   ;;  %vm793_vm10 = vcmask (!%p287_p13), 195744   ;;  %vm838_vm11 = vcmask (!%p287_p13), 228544   ;;  %vm873_vm12 = vcmask (!%p287_p13), 261344  }
  0x25   : > { %v445_v2 = vadd.s32 (!%p287_p13), 8, %v1625_v1  ;;  %vm446_vm0 = vcmp.ne.s32.totalorder (!%p287_p13), %v1625_v1, 0  ;;  %vm474_vm1 = vcmp.lt.s32.totalorder (!%p287_p13), %v1625_v1, 1  ;;  %vm589_vm2 = vcmp.lt.s32.totalorder (!%p287_p13), %v1625_v1, 7  ;;  %s1674_s30 = sld [smem:[#allocation5 + %s1512_s1]] (!%p287_p13)  ;;  %p437_p6 = scmp.lt.s32.totalorder (!%p287_p13), %s1512_s1, 1 }
  0x26   : > { %v1651_v7 = vsel (!%p287_p13), %vm446_vm0, 1.0, %v1532_v6  ;;  %s1534_s13 = smov (!%p287_p13), 8   ;;  %vm918_vm13 = vcmask (!%p287_p13), 294144   ;;  %vm955_vm14 = vcmask (!%p287_p13), 293888   ;;  %vm1143_vm15 = vcmask (!%p287_p13), 64512  }
  0x27   : > { %vm453_vm3 = vcmp.ne.s32.totalorder (!%p287_p13), %v445_v2, 15 }
  0x28   : > { %v1671_v18 = vsel (!%p287_p13), %vm453_vm3, 1.0, %v1532_v6 }
  0x29   : > { %s2309_s14 = smov (!%p347_p1, %s1516_s14), 1  ;;  %s2311_s20 = smov (!%p349_p2, %s1306_s20), 15 }
  0x2a   : > { %s1627_s21 = sshll.u32 %s2309_s14, 5  ;;  %s1307_s22 = sshll.u32 %s2311_s20, 1 }
  0x2b   : > { %s1631_s23 = sadd.s32 %s1627_s21, %s1307_s22  ;;  %p360_p4 = scmp.lt.s32.totalorder %s1654_s28, 15 }
  0x2c   : > { %s1309_s24 = sshll.u32 %s1631_s23, 2  ;;  %p371_p5 = scmp.lt.s32.totalorder %s1674_s30, 15 }
  0x2d   : > { %s1638_s27 = scalar_lea.vmem %s2290_s2, %s1309_s24  ;;  %s2313_s28 = smov (!%p360_p4, %s1654_s28), 15 }
  0x2e   : > { %v1643_v3 = vld [vmem:[%s1638_s27] sm:$0xff]   ;;  %v1646_v4 = vld [vmem:[%s1638_s27 + $0x18] sm:$0xff]   ;;  %v1668_v17 = vld [vmem:[%s1638_s27 + $0x8] sm:$0xff]   ;;  %s1694_s9 = scalar_select %p427_p3, 1, 0 }
  0x2f   : > { %v1649_v5 = vld [vmem:[%s1638_s27 + $0x20] sm:$0xff]   ;;  %v408_v8 = vunpack.c.h.bf16 %v1643_v3  ;;  %v407_v9 = vunpack.c.l.bf16 %v1643_v3  ;;  %v414_v10 = vunpack.c.h.bf16 %v1646_v4  ;;  %v413_v11 = vunpack.c.l.bf16 %v1646_v4  ;;  %542 = vrot.lane.b32.xlu1 %v1643_v3, %s1533_s29  ;;  %548 = vrot.lane.b32.xlu0 %v1646_v4, %s1533_s29  ;;  %v1687_v23 = vld [vmem:[%s1638_s27 + $0x38] sm:$0xff]   ;;  %s1310_s11 = sshll.u32 %s2313_s28, 1  ;;  %s2315_s30 = smov (!%p371_p5, %s1674_s30), 15 }
  0x30   : > { %v415_v12 = vunpack.c.l.bf16 %v1649_v5  ;;  %v416_v13 = vunpack.c.h.bf16 %v1649_v5  ;;  %v1690_v24 = vld [vmem:[%s1638_s27 + $0x28] sm:$0xff]   ;;  %v409_v29 = vunpack.c.l.bf16 %v1668_v17  ;;  %v422_v33 = vunpack.c.h.bf16 %v1687_v23  ;;  %s429_s10 = scvt.s32.f32 %s1694_s9  ;;  %s364_s12 = sadd.s32 %s1310_s11, %s1627_s21 }
  0x31   : > { %v461_v14 = vrot.slane %v408_v8, 7  ;;  %v576_v15 = vrot.slane %v408_v8, 1  ;;  %v1665_v16 = vrot.slane %v407_v9, 1  ;;  %v1676_v19 = vrot.slane %v407_v9, 7  ;;  %s1312_s0 = sshll.u32 %s364_s12, 2  ;;  %s1313_s25 = sshll.u32 %s2315_s30, 1 }
  0x32   : > { %v1678_v20 = vrot.slane %v414_v10, 7  ;;  %v582_v21 = vrot.slane %v414_v10, 1  ;;  %v1684_v22 = vrot.slane %v413_v11, 1  ;;  %v468_v25 = vrot.slane %v415_v12, 7  ;;  %s366_s22 = scalar_lea.vmem %s2291_s3, %s1312_s0  ;;  %s375_s26 = sadd.s32 %s1313_s25, %s1627_s21 }
  0x33   : > { %v469_v26 = vrot.slane %v416_v13, 7  ;;  %v583_v27 = vrot.slane %v415_v12, 1  ;;  %v584_v28 = vrot.slane %v416_v13, 1  ;;  %v602_v30 = vsel %vm589_vm2, %v1665_v16, %v576_v15  ;;  %550 = vrot.lane.b32.xlu1 %v1649_v5, %s1533_s29  ;;  %v1346_v63 = vld [vmem:[%s366_s22] sm:$0xff]   ;;  %s1792_s24 = scalar_select %p437_p6, 1, 0 }
  0x34   : > { %v596_v31 = vsel %vm589_vm2, %v1684_v22, %v582_v21  ;;  %v1712_v34 = vsel %vm474_vm1, %v1676_v19, %v461_v14  ;;  %v417_v35 = vunpack.c.l.bf16 %v1690_v24  ;;  %v1715_v36 = vrot.slane %v409_v29, 1  ;;  %v1798_v13 = vld [vmem:[%s1638_s27 + $0x30] sm:$0xff]   ;;  %s1315_s1 = sshll.u32 %s375_s26, 2  ;;  %s1535_s28 = smov 12  }
  0x35   : > { %v595_v32 = vsel %vm589_vm2, %v582_v21, %v583_v27  ;;  %v594_v38 = vsel %vm589_vm2, %v583_v27, %v584_v28  ;;  %v410_v39 = vunpack.c.h.bf16 %v1668_v17  ;;  %v1724_v40 = vrot.slane %v422_v33, 7  ;;  %v1815_v27 = vld [vmem:[%s1638_s27 + $0x10] sm:$0xff]   ;;  %s377_s9 = scalar_lea.vmem %s2292_s4, %s1315_s1  ;;  %s1536_s27 = smov 16  }
  0x36   : > { %v615_v37 = vmul.f32 %v1671_v18, %v595_v32  ;;  %v1726_v41 = vrot.slane %v417_v35, 1  ;;  %v1728_v42 = vrot.slane %v409_v29, 7  ;;  %v479_v43 = vsel %vm474_vm1, %v468_v25, %v469_v26  ;;  %s1537_s11 = smov 20   ;;  %s1538_s12 = smov 24  }
  0x37   : > { %v601_v44 = vsel %vm589_vm2, %v576_v15, %v1715_v36  ;;  %v1740_v46 = vrot.slane %v410_v39, 7  ;;  %v480_v47 = vsel %vm474_vm1, %v1678_v20, %v468_v25  ;;  %v675_v49 = vsel %vm474_vm1, %v1724_v40, %v1676_v19  ;;  %s1539_s0 = smov 28   ;;  %s1540_s25 = smov 32  }
  0x38   : > { %v1736_v45 = vpack.c.bf16 %v615_v37, %v596_v31  ;;  %v609_v48 = vmul.f32 %v1671_v18, %v601_v44  ;;  %v593_v50 = vsel %vm589_vm2, %v584_v28, %v1726_v41  ;;  %v486_v51 = vsel %vm474_vm1, %v461_v14, %v1728_v42  ;;  %v1350_v44 = vld [vmem:[%s377_s9] sm:$0xff]   ;;  %s1319_s30 = sshll.u32 %s1631_s23, 3 }
  0x39   : > { %v676_v52 = vmul.f32 %v1651_v7, %v675_v49  ;;  %v617_v53 = vmul.f32 %v1671_v18, %v593_v50  ;;  %v1767_v54 = vsel %vm474_vm1, %v1728_v42, %v1740_v46  ;;  %v495_v55 = vmul.f32 %v1651_v7, %v486_v51 }
  0x3a   : > { %646 = vrot.lane.b32.xlu1 %v1736_v45, %s1534_s13  ;;  %v1770_v56 = vpack.c.bf16 %v609_v48, %v602_v30  ;;  %v501_v57 = vmul.f32 %v1651_v7, %v480_v47  ;;  %v418_v58 = vunpack.c.h.bf16 %v1690_v24  ;;  %v470_v59 = vrot.slane %v417_v35, 7 }
  0x3b   : > { %v679_v60 = vpack.c.bf16 %v1712_v34, %v676_v52  ;;  %v1778_v61 = vpack.c.bf16 %v617_v53, %v594_v38  ;;  %v509_v62 = vpack.c.bf16 %v1767_v54, %v495_v55  ;;  %v430_v0 = vstv %s429_s10  ;;  %s439_s10 = scvt.s32.f32 %s1792_s24 }
  0x3c   : > { %640 = vrot.lane.b32.xlu0 %v1770_v56, %s1534_s13  ;;  %v1786_v2 = vpack.c.bf16 %v479_v43, %v501_v57  ;;  %v471_v6 = vrot.slane %v418_v58, 7  ;;  %v478_v8 = vsel %vm474_vm1, %v469_v26, %v470_v59  ;;  %v1347_v9 = vunpack.c.l.bf16 %v1346_v63 }
  0x3d   : > { %v503_v10 = vmul.f32 %v1651_v7, %v478_v8  ;;  %v1348_v12 = vunpack.c.h.bf16 %v1346_v63  ;;  %518 = vst.msk [vmem:[#allocation2 + $0x10] sm:$0xff] %vm515_vm4, %v509_v62  ;;  %v419_v26 = vunpack.c.l.bf16 %v1798_v13  ;;  %v420_v29 = vunpack.c.h.bf16 %v1798_v13 }
  0x3e   : > { %648 = vrot.lane.b32.xlu1 %v1778_v61, %s1534_s13  ;;  %v477_v14 = vsel %vm474_vm1, %v470_v59, %v471_v6  ;;  %521 = vst.msk [vmem:[#allocation2 + $0x28] sm:$0xff] %vm515_vm4, %v1786_v2  ;;  %v1811_v25 = vmul.f32 %v1347_v9, %v430_v0  ;;  %v466_v30 = vrot.slane %v413_v11, 7  ;;  %v411_v31 = vunpack.c.l.bf16 %v1815_v27 }
  0x3f   : > { %v1806_v15 = vpack.c.bf16 %v477_v14, %v503_v10  ;;  %v1808_v21 = vmul.f32 %v1348_v12, %v430_v0  ;;  %v586_v35 = vrot.slane %v418_v58, 1  ;;  %v1832_v37 = vrot.slane %v419_v26, 1 }
  0x40   : > { %689 = vrot.lane.b32.xlu0 %v679_v60, %s1535_s28  ;;  %v573_v32 = vrot.slane %v1811_v25, 1  ;;  %v472_v38 = vrot.slane %v419_v26, 7  ;;  %v1839_v47 = vrot.slane %v420_v29, 7  ;;  %v412_v11 = vunpack.c.h.bf16 %v1815_v27 }
  0x41   : > { %v574_v28 = vrot.slane %v1808_v21, 1  ;;  %522 = vst.msk [vmem:[#allocation2 + $0x30] sm:$0xff] %vm515_vm4, %v1806_v15  ;;  %v464_v48 = vrot.slane %v411_v31, 7  ;;  %v524_v49 = vpack.c.bf16 %v1808_v21, %v1811_v25  ;;  %v440_v50 = vstv %s439_s10 }
  0x42   : > { %697 = vrot.lane.b32.xlu1 %v1786_v2, %s1535_s28  ;;  %v476_v51 = vsel %vm474_vm1, %v471_v6, %v472_v38  ;;  %v475_v52 = vsel %vm474_vm1, %v472_v38, %v1839_v47  ;;  %v465_v55 = vrot.slane %v412_v11, 7  ;;  %v591_v59 = vsel %vm589_vm2, %v586_v35, %v1832_v37 }
  0x43   : > { %v603_v43 = vsel %vm589_vm2, %v574_v28, %v1665_v16  ;;  %v505_v53 = vmul.f32 %v1651_v7, %v476_v51  ;;  %v484_v57 = vsel %vm474_vm1, %v1740_v46, %v464_v48  ;;  %v1352_v60 = vunpack.c.h.bf16 %v1350_v44 }
  0x44   : > { %691 = vrot.lane.b32.xlu0 %v509_v62, %s1535_s28  ;;  %v607_v58 = vmul.f32 %v1671_v18, %v603_v43  ;;  %v497_v62 = vmul.f32 %v1651_v7, %v484_v57  ;;  %v604_v63 = vsel %vm589_vm2, %v573_v32, %v574_v28  ;;  %v421_v0 = vunpack.c.l.bf16 %v1687_v23 }
  0x45   : > { %v1866_v46 = vpack.c.bf16 %v475_v52, %v505_v53  ;;  %v578_v6 = vrot.slane %v410_v39, 1  ;;  %v1873_v8 = vrot.slane %v411_v31, 1  ;;  %v1877_v10 = vrot.slane %v420_v29, 1 }
  0x46   : > { %699 = vrot.lane.b32.xlu1 %v1806_v15, %s1535_s28  ;;  %v592_v12 = vsel %vm589_vm2, %v1726_v41, %v586_v35  ;;  %v619_v14 = vmul.f32 %v1671_v18, %v591_v59  ;;  %v671_v26 = vrot.slane %v421_v0, 7  ;;  %v482_v28 = vsel %vm474_vm1, %v465_v55, %v466_v30 }
  0x47   : > { %523 = vst.msk [vmem:[#allocation2 + $0x38] sm:$0xff] %vm515_vm4, %v1866_v46  ;;  %v459_v39 = vrot.slane %v1808_v21, 7  ;;  %v622_v31 = vpack.c.bf16 %v607_v58, %v604_v63  ;;  %v1889_v29 = vmul.f32 %v1352_v60, %v440_v50  ;;  %v605_v41 = vsel %vm589_vm2, %v1877_v10, %v573_v32 }
  0x48   : > { %724 = vrot.lane.b32.xlu0 %v1643_v3, %s1536_s27  ;;  %v483_v3 = vsel %vm474_vm1, %v464_v48, %v465_v55  ;;  %v1899_v35 = vmul.f32 %v1671_v18, %v605_v41  ;;  %v673_v21 = vsel %vm474_vm1, %v671_v26, %v1724_v40  ;;  %v481_v38 = vsel %vm474_vm1, %v466_v30, %v1678_v20 }
  0x49   : > { %v1875_v9 = vpack.c.bf16 %v483_v3, %v497_v62  ;;  %v599_v32 = vsel %vm589_vm2, %v578_v6, %v1873_v8  ;;  %v674_v43 = vsel %vm474_vm1, %v1839_v47, %v671_v26  ;;  %v499_v48 = vmul.f32 %v1651_v7, %v482_v28 }
  0x4a   : > { %732 = vrot.lane.b32.xlu1 %v1649_v5, %s1536_s27  ;;  %v757_v51 = vrot.slane %v421_v0, 1  ;;  %v677_v52 = vmul.f32 %v1651_v7, %v674_v43  ;;  %v758_v53 = vrot.slane %v422_v33, 1  ;;  %v803_v20 = vrot.slane %v1889_v29, 7 }
  0x4b   : > { %519 = vst.msk [vmem:[#allocation2 + $0x18] sm:$0xff] %vm515_vm4, %v1875_v9  ;;  %v1921_v30 = vpack.c.bf16 %v481_v38, %v499_v48  ;;  %v1351_v55 = vunpack.c.l.bf16 %v1350_v44  ;;  %v488_v57 = vsel %vm474_vm1, %v459_v39, %v1676_v19  ;;  %v883_v62 = vrot.slane %v1889_v29, 1 }
  0x4c   : > { %540 = vrot.lane.b32.xlu0 %v524_v49, %s1533_s29  ;;  %v1914_v49 = vpack.c.bf16 %v619_v14, %v592_v12  ;;  %v1928_v58 = vpack.c.bf16 %v673_v21, %v677_v52  ;;  %v1932_v33 = vsel %vm589_vm2, %v757_v51, %v758_v53  ;;  %v761_v59 = vsel %vm589_vm2, %v758_v53, %v1665_v16 }
  0x4d   : > { %v493_v44 = vmul.f32 %v1651_v7, %v488_v57  ;;  %v1939_v60 = vmul.f32 %v1671_v18, %v761_v59  ;;  %v1941_v19 = vmul.f32 %v1351_v55, %v440_v50  ;;  %520 = vst.msk [vmem:[#allocation2 + $0x20] sm:$0xff] %vm515_vm4, %v1921_v30  ;;  %v600_v63 = vsel %vm589_vm2, %v1715_v36, %v578_v6  ;;  %v1455_v55 = vld [vmem:[%s2293_s5 + $0x10] ss:$0 sps:$4 sm:$0x33]  }
  0x4e   : > { %734 = vrot.lane.b32.xlu1 %v1690_v24, %s1536_s27  ;;  %v458_v16 = vrot.slane %v1811_v25, 7  ;;  %v611_v0 = vmul.f32 %v1671_v18, %v599_v32  ;;  %v886_v25 = vsel %vm589_vm2, %v883_v62, %v1715_v36  ;;  %v982_v57 = vsel %vm980_vm5, %v1455_v55, 0 }
  0x4f   : > { %v508_v3 = vpack.c.bf16 %v1712_v34, %v493_v44  ;;  %v766_v50 = vpack.c.bf16 %v1939_v60, %v1932_v33  ;;  %v802_v12 = vrot.slane %v1941_v19, 7  ;;  %v882_v14 = vrot.slane %v1941_v19, 1 }
  0x50   : > { %638 = vrot.lane.b32.xlu0 %v622_v31, %s1534_s13  ;;  %v806_v34 = vsel %vm474_vm1, %v803_v20, %v1728_v42  ;;  %v489_v6 = vsel %vm474_vm1, %v458_v16, %v459_v39  ;;  %v490_v26 = vsel %vm474_vm1, %v1839_v47, %v458_v16  ;;  %v1992_v41 = vmul.f32 %v1671_v18, %v886_v25 }
  0x51   : > { %517 = vst.msk [vmem:[#allocation2 + $0x8] sm:$0xff] %vm515_vm4, %v508_v3  ;;  %v1974_v28 = vsel %vm474_vm1, %v802_v12, %v803_v20  ;;  %v805_v42 = vsel %vm474_vm1, %v1724_v40, %v802_v12  ;;  %v885_v31 = vsel %vm589_vm2, %v758_v53, %v882_v14  ;;  %v1983_v36 = vsel %vm589_vm2, %v882_v14, %v883_v62 }
  0x52   : > { %777 = vrot.lane.b32.xlu1 %v1778_v61, %s1537_s11  ;;  %v1986_v39 = vmul.f32 %v1651_v7, %v805_v42  ;;  %v1989_v47 = vmul.f32 %v1671_v18, %v885_v31  ;;  %v491_v21 = vmul.f32 %v1651_v7, %v490_v26  ;;  %v624_v40 = vpack.c.bf16 %v611_v0, %v600_v63 }
  0x53   : > { %v807_v38 = vmul.f32 %v1651_v7, %v806_v34  ;;  %v891_v48 = vpack.c.bf16 %v1992_v41, %v1983_v36  ;;  %v580_v20 = vrot.slane %v412_v11, 1  ;;  %v847_v1 = vpack.c.bf16 %v1889_v29, %v1941_v19 }
  0x54   : > { %726 = vrot.lane.b32.xlu0 %v1668_v17, %s1536_s27  ;;  %v811_v32 = vpack.c.bf16 %v1974_v28, %v1986_v39  ;;  %v890_v43 = vpack.c.bf16 %v1989_v47, %v1932_v33  ;;  %v507_v52 = vpack.c.bf16 %v489_v6, %v491_v21 }
  0x55   : > { %v810_v7 = vpack.c.bf16 %v1767_v54, %v807_v38  ;;  %v760_v54 = vsel %vm589_vm2, %v1877_v10, %v757_v51  ;;  %v590_v51 = vsel %vm589_vm2, %v1832_v37, %v1877_v10  ;;  %v597_v37 = vsel %vm589_vm2, %v580_v20, %v1684_v22 }
  0x56   : > { %779 = vrot.lane.b32.xlu1 %v1914_v49, %s1537_s11  ;;  %516 = vst.msk [vmem:[#allocation2] sm:$0xff] %vm515_vm4, %v507_v52  ;;  %v762_v53 = vmul.f32 %v1671_v18, %v760_v54  ;;  %v613_v10 = vmul.f32 %v1671_v18, %v597_v37  ;;  %v598_v59 = vsel %vm589_vm2, %v1873_v8, %v580_v20 }
  0x57   : > { %v629_v18 = vpack.c.bf16 %v1899_v35, %v590_v51 }
  0x58   : > { %769 = vrot.lane.b32.xlu0 %v1770_v56, %s1537_s11  ;;  %v1453_v56 = vld [vmem:[%s2293_s5] sm:$0xff]   ;;  %v765_v11 = vpack.c.bf16 %v762_v53, %v590_v51 }
  0x59   : > { %1386 = vmatprep.subr.bf16.mxu1 %v1453_v56  ;;  %1364 = vmatprep.subr.bf16.mxu0 %v1453_v56 }
  0x5a   : > { %822 = vrot.lane.b32.xlu1 %v1806_v15, %s1538_s12  ;;  %1389 = vmatpush3.bf16.msra.mxu1 %v1453_v56  ;;  %v1454_v15 = vld [vmem:[%s2293_s5 + $0x8] sm:$0xff]  }
  0x5b   : > { %1365 = vmatpush3.bf16.msra.mxu0 %v1453_v56  ;;  %1387 = vmatprep.subr.bf16.mxu1 %v1454_v15 }
  0x5c   : > { %771 = vrot.lane.b32.xlu0 %v624_v40, %s1537_s11  ;;  %1366 = vmatprep.subr.bf16.mxu0 %v1454_v15 }
  0x5e   : > { %824 = vrot.lane.b32.xlu1 %v1866_v46, %s1538_s12  ;;  %1390 = vmatpush3.bf16.msra.mxu1 %v1454_v15 }
  0x5f   : > { %1367 = vmatpush3.bf16.msra.mxu0 %v1454_v15  ;;  %1393 = vmatprep.subr.msk.bf16.mxu1 %vm980_vm5, %v1455_v55 }
  0x60   : > { %814 = vrot.lane.b32.xlu0 %v810_v7, %s1538_s12  ;;  %1392 = vmatprep.subr.msk.bf16.mxu0 %vm980_vm5, %v1455_v55 }
  0x62   : > { %857 = vrot.lane.b32.xlu1 %v1690_v24, %s1539_s0  ;;  %1391 = vmatpush3.bf16.msra.mxu1 %v982_v57 }
  0x63   : > { %1369 = vmatpush3.bf16.msra.mxu0 %v982_v57 }
  0x64   : > { %816 = vrot.lane.b32.xlu0 %v1875_v9, %s1538_s12 }
  0x66   : > { %859 = vrot.lane.b32.xlu1 %v1798_v13, %s1539_s0 }
  0x68   : > { %849 = vrot.lane.b32.xlu0 %v1668_v17, %s1539_s0 }
  0x6a   : > { %902 = vrot.lane.b32.xlu1 %v1914_v49, %s1540_s25 }
  0x6c   : > { %851 = vrot.lane.b32.xlu0 %v1815_v27, %s1539_s0 }
  0x6e   : > { %552 = vrot.lane.b32.xlu1 %v1690_v24, %s1533_s29  ;;  %v625_v24 = vpack.c.bf16 %v613_v10, %v598_v59 }
  0x70   : > { %894 = vrot.lane.b32.xlu0 %v624_v40, %s1540_s25 }
  0x72   : > { %904 = vrot.lane.b32.xlu1 %v765_v11, %s1540_s25 }
  0x74   : > { %544 = vrot.lane.b32.xlu0 %v1668_v17, %s1533_s29 }
  0x76   : > { %554 = vrot.lane.b32.xlu1 %v1798_v13, %s1533_s29 }
  0x78   : > { %896 = vrot.lane.b32.xlu0 %v625_v24, %s1540_s25 }
  0x7a   : > { %650 = vrot.lane.b32.xlu1 %v1914_v49, %s1534_s13 }
  0x7c   : > { %546 = vrot.lane.b32.xlu0 %v1815_v27, %s1533_s29 }
  0x7e   : > { %652 = vrot.lane.b32.xlu1 %v629_v18, %s1534_s13 }
  0x80   : > { %642 = vrot.lane.b32.xlu0 %v624_v40, %s1534_s13 }
  0x82   : > { %701 = vrot.lane.b32.xlu1 %v1866_v46, %s1535_s28 }
  0x84   : > { %644 = vrot.lane.b32.xlu0 %v625_v24, %s1534_s13 }
  0x86   : > { %703 = vrot.lane.b32.xlu1 %v1928_v58, %s1535_s28 }
  0x88   : > { %693 = vrot.lane.b32.xlu0 %v1875_v9, %s1535_s28 }
  0x8a   : > { %736 = vrot.lane.b32.xlu1 %v1798_v13, %s1536_s27 }
  0x8c   : > { %695 = vrot.lane.b32.xlu0 %v1921_v30, %s1535_s28 }
  0x8e   : > { %738 = vrot.lane.b32.xlu1 %v1687_v23, %s1536_s27 }
  0x90   : > { %728 = vrot.lane.b32.xlu0 %v1815_v27, %s1536_s27 }
  0x92   : > { %781 = vrot.lane.b32.xlu1 %v765_v11, %s1537_s11 }
  0x94   : > { %730 = vrot.lane.b32.xlu0 %v1646_v4, %s1536_s27  ;;  %s2212_s27 = scalar_lea.vmem %s2296_s8, %s1319_s30 }
  0x96   : > { %783 = vrot.lane.b32.xlu1 %v766_v50, %s1537_s11 }
  0x98   : > { %773 = vrot.lane.b32.xlu0 %v625_v24, %s1537_s11 }
  0x9a   : > { %826 = vrot.lane.b32.xlu1 %v1928_v58, %s1538_s12 }
  0x9c   : > { %775 = vrot.lane.b32.xlu0 %v1736_v45, %s1537_s11 }
  0x9e   : > { %828 = vrot.lane.b32.xlu1 %v811_v32, %s1538_s12 }
  0xa0   : > { %818 = vrot.lane.b32.xlu0 %v1921_v30, %s1538_s12 }
  0xa1   : > { %v543_v17 = vpop.permute.xlu1 %542  ;;  %v549_v22 = vpop.permute.xlu0 %548 }
  0xa2   : > { %861 = vrot.lane.b32.xlu1 %v1687_v23, %s1539_s0  ;;  %566 = vst.msk [vmem:[#allocation2 + $0x8] sm:$0xff] %vm564_vm6, %v543_v17  ;;  %569 = vst.msk [vmem:[#allocation2 + $0x20] sm:$0xff] %vm564_vm6, %v549_v22 }
  0xa4   : > { %820 = vrot.lane.b32.xlu0 %v1786_v2, %s1538_s12 }
  0xa5   : > { %v551_v13 = vpop.permute.xlu1 %550 }
  0xa6   : > { %863 = vrot.lane.b32.xlu1 %v847_v1, %s1539_s0  ;;  %570 = vst.msk [vmem:[#allocation2 + $0x28] sm:$0xff] %vm564_vm6, %v551_v13 }
  0xa8   : > { %853 = vrot.lane.b32.xlu0 %v1646_v4, %s1539_s0 }
  0xaa   : > { %906 = vrot.lane.b32.xlu1 %v890_v43, %s1540_s25 }
  0xac   : > { %v647_v23 = vpop.permute.xlu1 %646  ;;  %855 = vrot.lane.b32.xlu0 %v1649_v5, %s1539_s0 }
  0xad   : > { %667 = vst.msk [vmem:[#allocation2 + $0x20] sm:$0xff] %vm662_vm7, %v647_v23 }
  0xae   : > { %908 = vrot.lane.b32.xlu1 %v891_v48, %s1540_s25  ;;  %v641_v2 = vpop.permute.xlu0 %640 }
  0xaf   : > { %664 = vst.msk [vmem:[#allocation2 + $0x8] sm:$0xff] %vm662_vm7, %v641_v2 }
  0xb0   : > { %v649_v4 = vpop.permute.xlu1 %648  ;;  %898 = vrot.lane.b32.xlu0 %v1736_v45, %s1540_s25 }
  0xb1   : > { %668 = vst.msk [vmem:[#allocation2 + $0x28] sm:$0xff] %vm662_vm7, %v649_v4 }
  0xb2   : > { %v690_v27 = vpop.permute.xlu0 %689 }
  0xb4   : > { %v698_v46 = vpop.permute.xlu1 %697  ;;  %900 = vrot.lane.b32.xlu0 %v1778_v61, %s1540_s25 }
  0xb5   : > { %718 = vst.msk [vmem:[#allocation2 + $0x20] sm:$0xff] %vm713_vm8, %v698_v46 }
  0xb6   : > { %v692_v5 = vpop.permute.xlu0 %691 }
  0xb7   : > { %715 = vst.msk [vmem:[#allocation2 + $0x8] sm:$0xff] %vm713_vm8, %v692_v5  ;;  %v2197_v5 = vld [vmem:[%s2294_s6] ss:$0 sm:$0xff] }
  0xb8   : > { %v700_v8 = vpop.permute.xlu1 %699 }
  0xb9   : > { %719 = vst.msk [vmem:[#allocation2 + $0x28] sm:$0xff] %vm713_vm8, %v700_v8 }
  0xba   : > { %v725_v9 = vpop.permute.xlu0 %724 }
  0xbc   : > { %v733_v29 = vpop.permute.xlu1 %732 }
  0xbd   : > { %753 = vst.msk [vmem:[#allocation2 + $0x20] sm:$0xff] %vm748_vm9, %v733_v29 }
  0xbe   : > { %v541_v45 = vpop.permute.xlu0 %540 }
  0xbf   : > { %565 = vst.msk [vmem:[#allocation2] sm:$0xff] %vm564_vm6, %v541_v45 }
  0xc0   : > { %v735_v35 = vpop.permute.xlu1 %734 }
  0xc1   : > { %754 = vst.msk [vmem:[#allocation2 + $0x28] sm:$0xff] %vm748_vm9, %v735_v35 }
  0xc2   : > { %v639_v61 = vpop.permute.xlu0 %638 }
  0xc3   : > { %663 = vst.msk [vmem:[#allocation2] sm:$0xff] %vm662_vm7, %v639_v61 }
  0xc4   : > { %v778_v49 = vpop.permute.xlu1 %777  ;;  %714 = vst.msk [vmem:[#allocation2] sm:$0xff] %vm713_vm8, %v690_v27 }
  0xc5   : > { %798 = vst.msk [vmem:[#allocation2 + $0x20] sm:$0xff] %vm793_vm10, %v778_v49 }
  0xc6   : > { %749 = vst.msk [vmem:[#allocation2] sm:$0xff] %vm748_vm9, %v725_v9  ;;  %v727_v30 = vpop.permute.xlu0 %726  ;;  %v2202_v9 = vld [vmem:[%s2295_s7] ss:$0 sm:$0xff] }
  0xc7   : > { %750 = vst.msk [vmem:[#allocation2 + $0x8] sm:$0xff] %vm748_vm9, %v727_v30 }
  0xc8   : > { %v780_v58 = vpop.permute.xlu1 %779 }
  0xc9   : > { %799 = vst.msk [vmem:[#allocation2 + $0x28] sm:$0xff] %vm793_vm10, %v780_v58 }
  0xca   : > { %v770_v33 = vpop.permute.xlu0 %769 }
  0xcb   : > { %794 = vst.msk [vmem:[#allocation2] sm:$0xff] %vm793_vm10, %v770_v33 }
  0xcc   : > { %v823_v44 = vpop.permute.xlu1 %822 }
  0xcd   : > { %843 = vst.msk [vmem:[#allocation2 + $0x20] sm:$0xff] %vm838_vm11, %v823_v44 }
  0xce   : > { %v772_v60 = vpop.permute.xlu0 %771 }
  0xcf   : > { %795 = vst.msk [vmem:[#allocation2 + $0x8] sm:$0xff] %vm793_vm10, %v772_v60 }
  0xd0   : > { %v825_v19 = vpop.permute.xlu1 %824 }
  0xd1   : > { %844 = vst.msk [vmem:[#allocation2 + $0x28] sm:$0xff] %vm838_vm11, %v825_v19 }
  0xd2   : > { %v815_v62 = vpop.permute.xlu0 %814 }
  0xd3   : > { %839 = vst.msk [vmem:[#allocation2] sm:$0xff] %vm838_vm11, %v815_v62 }
  0xd4   : > { %v858_v63 = vpop.permute.xlu1 %857 }
  0xd5   : > { %878 = vst.msk [vmem:[#allocation2 + $0x20] sm:$0xff] %vm873_vm12, %v858_v63 }
  0xd6   : > { %v817_v3 = vpop.permute.xlu0 %816 }
  0xd7   : > { %840 = vst.msk [vmem:[#allocation2 + $0x8] sm:$0xff] %vm838_vm11, %v817_v3 }
  0xd8   : > { %v860_v16 = vpop.permute.xlu1 %859 }
  0xd9   : > { %879 = vst.msk [vmem:[#allocation2 + $0x28] sm:$0xff] %vm873_vm12, %v860_v16 }
  0xda   : > { %v850_v0 = vpop.permute.xlu0 %849 }
  0xdb   : > { %874 = vst.msk [vmem:[#allocation2] sm:$0xff] %vm873_vm12, %v850_v0 }
  0xdc   : > { %v903_v50 = vpop.permute.xlu1 %902 }
  0xdd   : > { %923 = vst.msk [vmem:[#allocation2 + $0x20] sm:$0xff] %vm918_vm13, %v903_v50 }
  0xde   : > { %v852_v12 = vpop.permute.xlu0 %851 }
  0xdf   : > { %875 = vst.msk [vmem:[#allocation2 + $0x8] sm:$0xff] %vm873_vm12, %v852_v12 }
  0xe0   : > { %v553_v14 = vpop.permute.xlu1 %552 }
  0xe1   : > { %571 = vst.msk [vmem:[#allocation2 + $0x30] sm:$0xff] %vm564_vm6, %v553_v14 }
  0xe2   : > { %v895_v34 = vpop.permute.xlu0 %894 }
  0xe3   : > { %919 = vst.msk [vmem:[#allocation2] sm:$0xff] %vm918_vm13, %v895_v34 }
  0xe4   : > { %v905_v25 = vpop.permute.xlu1 %904  ;;  %v931_v6 = vld [vmem:[#allocation2 + $0x20] sm:$0xff] }
  0xe5   : > { %924 = vst.msk [vmem:[#allocation2 + $0x28] sm:$0xff] %vm918_vm13, %v905_v25  ;;  %1378 = vmatprep.mubr.msk.bf16.mxu1 %vm955_vm14, %v931_v6 }
  0xe6   : > { %v545_v26 = vpop.permute.xlu0 %544 }
  0xe7   : > { %567 = vst.msk [vmem:[#allocation2 + $0x10] sm:$0xff] %vm564_vm6, %v545_v26 }
  0xe8   : > { %v555_v28 = vpop.permute.xlu1 %554 }
  0xe9   : > { %572 = vst.msk [vmem:[#allocation2 + $0x38] sm:$0xff] %vm564_vm6, %v555_v28 }
  0xea   : > { %v897_v42 = vpop.permute.xlu0 %896  ;;  %v927_v31 = vld [vmem:[#allocation2] sm:$0xff] }
  0xeb   : > { %920 = vst.msk [vmem:[#allocation2 + $0x8] sm:$0xff] %vm918_vm13, %v897_v42  ;;  %1370 = vmatprep.mubr.msk.bf16.mxu0 %vm955_vm14, %v927_v31 }
  0xec   : > { %v651_v36 = vpop.permute.xlu1 %650  ;;  %v932_v39 = vld [vmem:[#allocation2 + $0x28] sm:$0xff] }
  0xed   : > { %669 = vst.msk [vmem:[#allocation2 + $0x30] sm:$0xff] %vm662_vm7, %v651_v36  ;;  %1379 = vmatmul.mubr.msk.bf16.vlgmr.msra.gmra.mrb[0].mxu1 %vm955_vm14, %v932_v39 }
  0xee   : > { %v547_v47 = vpop.permute.xlu0 %546 }
  0xef   : > { %568 = vst.msk [vmem:[#allocation2 + $0x18] sm:$0xff] %vm564_vm6, %v547_v47 }
  0xf0   : > { %v653_v41 = vpop.permute.xlu1 %652 }
  0xf1   : > { %670 = vst.msk [vmem:[#allocation2 + $0x38] sm:$0xff] %vm662_vm7, %v653_v41 }
  0xf2   : > { %v643_v21 = vpop.permute.xlu0 %642  ;;  %v928_v40 = vld [vmem:[#allocation2 + $0x8] sm:$0xff] }
  0xf3   : > { %665 = vst.msk [vmem:[#allocation2 + $0x10] sm:$0xff] %vm662_vm7, %v643_v21  ;;  %1371 = vmatmul.mubr.msk.bf16.vlgmr.msra.gmra.mrb[0].mxu0 %vm955_vm14, %v928_v40 }
  0xf4   : > { %v702_v38 = vpop.permute.xlu1 %701 }
  0xf5   : > { %720 = vst.msk [vmem:[#allocation2 + $0x30] sm:$0xff] %vm713_vm8, %v702_v38 }
  0xf6   : > { %v645_v32 = vpop.permute.xlu0 %644 }
  0xf7   : > { %666 = vst.msk [vmem:[#allocation2 + $0x18] sm:$0xff] %vm662_vm7, %v645_v32 }
  0xf8   : > { %v704_v43 = vpop.permute.xlu1 %703 }
  0xf9   : > { %721 = vst.msk [vmem:[#allocation2 + $0x38] sm:$0xff] %vm713_vm8, %v704_v43 }
  0xfa   : > { %v694_v48 = vpop.permute.xlu0 %693 }
  0xfb   : > { %716 = vst.msk [vmem:[#allocation2 + $0x10] sm:$0xff] %vm713_vm8, %v694_v48 }
  0xfc   : > { %v737_v52 = vpop.permute.xlu1 %736 }
  0xfd   : > { %755 = vst.msk [vmem:[#allocation2 + $0x30] sm:$0xff] %vm748_vm9, %v737_v52 }
  0xfe   : > { %v696_v7 = vpop.permute.xlu0 %695 }
  0xff   : > { %717 = vst.msk [vmem:[#allocation2 + $0x18] sm:$0xff] %vm713_vm8, %v696_v7 }
 0x100   : > { %v739_v56 = vpop.permute.xlu1 %738 }
 0x101   : > { %756 = vst.msk [vmem:[#allocation2 + $0x38] sm:$0xff] %vm748_vm9, %v739_v56 }
 0x102   : > { %v729_v54 = vpop.permute.xlu0 %728 }
 0x103   : > { %751 = vst.msk [vmem:[#allocation2 + $0x10] sm:$0xff] %vm748_vm9, %v729_v54 }
 0x104   : > { %v782_v15 = vpop.permute.xlu1 %781 }
 0x105   : > { %800 = vst.msk [vmem:[#allocation2 + $0x30] sm:$0xff] %vm793_vm10, %v782_v15 }
 0x106   : > { %v731_v53 = vpop.permute.xlu0 %730 }
 0x107   : > { %752 = vst.msk [vmem:[#allocation2 + $0x18] sm:$0xff] %vm748_vm9, %v731_v53 }
 0x108   : > { %v784_v20 = vpop.permute.xlu1 %783 }
 0x109   : > { %801 = vst.msk [vmem:[#allocation2 + $0x38] sm:$0xff] %vm793_vm10, %v784_v20 }
 0x10a   : > { %v774_v51 = vpop.permute.xlu0 %773 }
 0x10b   : > { %796 = vst.msk [vmem:[#allocation2 + $0x10] sm:$0xff] %vm793_vm10, %v774_v51 }
 0x10c   : > { %v827_v55 = vpop.permute.xlu1 %826 }
 0x10d   : > { %845 = vst.msk [vmem:[#allocation2 + $0x30] sm:$0xff] %vm838_vm11, %v827_v55 }
 0x10e   : > { %v776_v57 = vpop.permute.xlu0 %775 }
 0x10f   : > { %797 = vst.msk [vmem:[#allocation2 + $0x18] sm:$0xff] %vm793_vm10, %v776_v57 }
 0x110   : > { %v829_v11 = vpop.permute.xlu1 %828 }
 0x111   : > { %846 = vst.msk [vmem:[#allocation2 + $0x38] sm:$0xff] %vm838_vm11, %v829_v11 }
 0x112   : > { %v819_v37 = vpop.permute.xlu0 %818 }
 0x113   : > { %841 = vst.msk [vmem:[#allocation2 + $0x10] sm:$0xff] %vm838_vm11, %v819_v37 }
 0x114   : > { %v862_v10 = vpop.permute.xlu1 %861 }
 0x115   : > { %880 = vst.msk [vmem:[#allocation2 + $0x30] sm:$0xff] %vm873_vm12, %v862_v10 }
 0x116   : > { %v821_v59 = vpop.permute.xlu0 %820 }
 0x117   : > { %842 = vst.msk [vmem:[#allocation2 + $0x18] sm:$0xff] %vm838_vm11, %v821_v59 }
 0x118   : > { %v864_v24 = vpop.permute.xlu1 %863 }
 0x119   : > { %881 = vst.msk [vmem:[#allocation2 + $0x38] sm:$0xff] %vm873_vm12, %v864_v24 }
 0x11a   : > { %v854_v18 = vpop.permute.xlu0 %853 }
 0x11b   : > { %876 = vst.msk [vmem:[#allocation2 + $0x10] sm:$0xff] %vm873_vm12, %v854_v18 }
 0x11c   : > { %v907_v1 = vpop.permute.xlu1 %906 }
 0x11d   : > { %925 = vst.msk [vmem:[#allocation2 + $0x30] sm:$0xff] %vm918_vm13, %v907_v1 }
 0x11e   : > { %v856_v17 = vpop.permute.xlu0 %855 }
 0x11f   : > { %877 = vst.msk [vmem:[#allocation2 + $0x18] sm:$0xff] %vm873_vm12, %v856_v17 }
 0x120   : > { %v909_v22 = vpop.permute.xlu1 %908 }
 0x121   : > { %926 = vst.msk [vmem:[#allocation2 + $0x38] sm:$0xff] %vm918_vm13, %v909_v22 }
 0x122   : > { %v899_v13 = vpop.permute.xlu0 %898 }
 0x123   : > { %921 = vst.msk [vmem:[#allocation2 + $0x10] sm:$0xff] %vm918_vm13, %v899_v13 }
 0x124   : > { %v933_v23 = vld [vmem:[#allocation2 + $0x30] sm:$0xff] }
 0x125   : > { %1382 = vmatprep.mubr.msk.bf16.mxu1 %vm955_vm14, %v933_v23 }
 0x126   : > { %v901_v2 = vpop.permute.xlu0 %900 }
 0x127   : > { %922 = vst.msk [vmem:[#allocation2 + $0x18] sm:$0xff] %vm918_vm13, %v901_v2 }
 0x128   : > { %v934_v4 = vld [vmem:[#allocation2 + $0x38] sm:$0xff] }
 0x129   : > { %1383 = vmatmul.mubr.msk.bf16.gmra.mrb[4].mxu1 %vm955_vm14, %v934_v4 }
 0x12a   : > { %v929_v27 = vld [vmem:[#allocation2 + $0x10] sm:$0xff] }
 0x12b   : > { %1374 = vmatprep.mubr.msk.bf16.mxu0 %vm955_vm14, %v929_v27 }
 0x12e   : > { %v930_v46 = vld [vmem:[#allocation2 + $0x18] sm:$0xff] }
 0x12f   : > { %1375 = vmatmul.mubr.msk.bf16.gmra.mrb[4].mxu0 %vm955_vm14, %v930_v46 }
 0x1c0   : > { %v1380_v8 = vpop.f32.mrb[0].mxu1 }
 0x1c1   : > { %v1098_v29 = vmul.f32 %v1380_v8, %v2197_v5  ;;  %v1050_v45 = vpop.f32.mrb[1].mxu1 }
 0x1c2   : > { %v1096_v35 = vmul.f32 %v2197_v5, %v1050_v45  ;;  %v1381_v61 = vpop.f32.mrb[2].mxu1 }
 0x1c3   : > { %v1121_v49 = vadd.f32 %v2202_v9, %v1098_v29  ;;  %v1099_v30 = vmul.f32 %v1381_v61, %v2197_v5  ;;  %v1053_v58 = vpop.f32.mrb[3].mxu1 }
 0x1c4   : > { %v1119_v33 = vadd.f32 %v2202_v9, %v1096_v35  ;;  %v1097_v44 = vmul.f32 %v2197_v5, %v1053_v58 }
 0x1c5   : > { %v1137_v60 = vmax.f32 %v1121_v49, 0.0  ;;  %v1122_v19 = vadd.f32 %v2202_v9, %v1099_v30 }
 0x1c6   : > { %v1135_v62 = vmax.f32 %v1119_v33, 0.0  ;;  %v1120_v63 = vadd.f32 %v2202_v9, %v1097_v44  ;;  %v1372_v16 = vpop.f32.mrb[0].mxu0 }
 0x1c7   : > { %1154 = vst.msk [vmem:[%s2212_s27 + $0x50] sm:$0xff] %vm1143_vm15, %v1137_v60  ;;  %v1138_v3 = vmax.f32 %v1122_v19, 0.0  ;;  %v1090_v0 = vmul.f32 %v1372_v16, %v2197_v5  ;;  %v1018_v12 = vpop.f32.mrb[1].mxu0 }
 0x1c8   : > { %1152 = vst.msk [vmem:[%s2212_s27 + $0x40] sm:$0xff] %vm1143_vm15, %v1135_v62  ;;  %v1136_v50 = vmax.f32 %v1120_v63, 0.0  ;;  %v1088_v14 = vmul.f32 %v2197_v5, %v1018_v12  ;;  %v1373_v34 = vpop.f32.mrb[2].mxu0 }
 0x1c9   : > { %1155 = vst.msk [vmem:[%s2212_s27 + $0x58] sm:$0xff] %vm1143_vm15, %v1138_v3  ;;  %v1113_v25 = vadd.f32 %v2202_v9, %v1090_v0  ;;  %v1091_v6 = vmul.f32 %v1373_v34, %v2197_v5  ;;  %v1021_v26 = vpop.f32.mrb[3].mxu0 }
 0x1ca   : > { %1153 = vst.msk [vmem:[%s2212_s27 + $0x48] sm:$0xff] %vm1143_vm15, %v1136_v50  ;;  %v1111_v28 = vadd.f32 %v2202_v9, %v1088_v14  ;;  %v1089_v42 = vmul.f32 %v2197_v5, %v1021_v26 }
 0x1cb   : > { %v1129_v31 = vmax.f32 %v1113_v25, 0.0  ;;  %v1114_v36 = vadd.f32 %v2202_v9, %v1091_v6 }
 0x1cc   : > { %v1127_v39 = vmax.f32 %v1111_v28, 0.0  ;;  %v1112_v47 = vadd.f32 %v2202_v9, %v1089_v42 }
 0x1cd   : > { %1146 = vst.msk [vmem:[%s2212_s27 + $0x10] sm:$0xff] %vm1143_vm15, %v1129_v31  ;;  %v1130_v41 = vmax.f32 %v1114_v36, 0.0 }
 0x1ce   : > { %1144 = vst.msk [vmem:[%s2212_s27] sm:$0xff] %vm1143_vm15, %v1127_v39  ;;  %v1128_v21 = vmax.f32 %v1112_v47, 0.0 }
 0x1cf   : > { %1147 = vst.msk [vmem:[%s2212_s27 + $0x18] sm:$0xff] %vm1143_vm15, %v1130_v41 }
 0x1d0   : > { %1145 = vst.msk [vmem:[%s2212_s27 + $0x8] sm:$0xff] %vm1143_vm15, %v1128_v21 }
 0x1fc   : > { %v1384_v40 = vpop.f32.mrb[4].mxu1 }
 0x1fd   : > { %v1102_v38 = vmul.f32 %v1384_v40, %v2197_v5  ;;  %v1066_v32 = vpop.f32.mrb[5].mxu1 }
 0x1fe   : > { %v1100_v43 = vmul.f32 %v2197_v5, %v1066_v32  ;;  %v1385_v48 = vpop.f32.mrb[6].mxu1 }
 0x1ff   : > { %v1125_v52 = vadd.f32 %v2202_v9, %v1102_v38  ;;  %v1103_v7 = vmul.f32 %v1385_v48, %v2197_v5  ;;  %v1069_v56 = vpop.f32.mrb[7].mxu1 }
 0x200   : > { %v1123_v54 = vadd.f32 %v2202_v9, %v1100_v43  ;;  %v1101_v15 = vmul.f32 %v2197_v5, %v1069_v56 }
 0x201   : > { %v1141_v53 = vmax.f32 %v1125_v52, 0.0  ;;  %v1126_v20 = vadd.f32 %v2202_v9, %v1103_v7 }
 0x202   : > { %v1139_v51 = vmax.f32 %v1123_v54, 0.0  ;;  %v1124_v55 = vadd.f32 %v2202_v9, %v1101_v15  ;;  %v1376_v11 = vpop.f32.mrb[4].mxu0 }
 0x203   : > { %1158 = vst.msk [vmem:[%s2212_s27 + $0x70] sm:$0xff] %vm1143_vm15, %v1141_v53  ;;  %v1142_v57 = vmax.f32 %v1126_v20, 0.0  ;;  %v1094_v37 = vmul.f32 %v1376_v11, %v2197_v5  ;;  %v1034_v59 = vpop.f32.mrb[5].mxu0 }
 0x204   : > { %1156 = vst.msk [vmem:[%s2212_s27 + $0x60] sm:$0xff] %vm1143_vm15, %v1139_v51  ;;  %v1140_v10 = vmax.f32 %v1124_v55, 0.0  ;;  %v1092_v24 = vmul.f32 %v2197_v5, %v1034_v59  ;;  %v1377_v18 = vpop.f32.mrb[6].mxu0 }
 0x205   : > { %1159 = vst.msk [vmem:[%s2212_s27 + $0x78] sm:$0xff] %vm1143_vm15, %v1142_v57  ;;  %v1117_v1 = vadd.f32 %v2202_v9, %v1094_v37  ;;  %v1095_v17 = vmul.f32 %v1377_v18, %v2197_v5  ;;  %v1037_v22 = vpop.f32.mrb[7].mxu0 }
 0x206   : > { %1157 = vst.msk [vmem:[%s2212_s27 + $0x68] sm:$0xff] %vm1143_vm15, %v1140_v10  ;;  %v1115_v13 = vadd.f32 %v2202_v9, %v1092_v24  ;;  %v1093_v23 = vmul.f32 %v2197_v5, %v1037_v22 }
 0x207   : > { %v1133_v2 = vmax.f32 %v1117_v1, 0.0  ;;  %v1118_v4 = vadd.f32 %v2202_v9, %v1095_v17 }
 0x208   : > { %v1131_v27 = vmax.f32 %v1115_v13, 0.0  ;;  %v1116_v46 = vadd.f32 %v2202_v9, %v1093_v23 }
 0x209   : > { %1150 = vst.msk [vmem:[%s2212_s27 + $0x30] sm:$0xff] %vm1143_vm15, %v1133_v2  ;;  %v1134_v8 = vmax.f32 %v1118_v4, 0.0 }
 0x20a   : > { %1148 = vst.msk [vmem:[%s2212_s27 + $0x20] sm:$0xff] %vm1143_vm15, %v1131_v27  ;;  %v1132_v29 = vmax.f32 %v1116_v46, 0.0 }
 0x20b   : > { %1151 = vst.msk [vmem:[%s2212_s27 + $0x38] sm:$0xff] %vm1143_vm15, %v1134_v8 }
 0x20c   : > { %1149 = vst.msk [vmem:[%s2212_s27 + $0x28] sm:$0xff] %vm1143_vm15, %v1132_v29 }
 0x20d PF: > { %s28_s17 = sadd.s32 1, %s1528_s17   ;;  %s2298_s1 = smov %s1520_s15 }
 0x20e   : > { %p25_p7 = scmp.ge.s32.totalorder %s28_s17, 6   ;;  %s2299_s14 = smov %s1524_s16 }
 0x20f   : > { %s2300_s15 = smov %s2303_s18  ;;  %s2301_s16 = smov %s2307_s19 }
 0x210   :  { %27 = sbr.rel (!%p25_p7) target bundleno = 28 (0x1c), region = 80 }

</bundles_post_ra>
